<compile_context>
chip_gen: v6e
topology: v6e:2x2x1
jax: 0.10.0
libtpu: 0.0.40
codegen_flags: <defaults>
</compile_context>

<pallas_src>
import functools
import math

import jax
import jax.numpy as jnp
from jax.experimental import pallas as pl
from jax.experimental.pallas import tpu as pltpu

VMEM_LIMIT = 48 * 1024 * 1024   # <= v7x physical (64 MiB), plenty on v5e/v6e
_NEG_INF = -1e30


# ----------------------------------------------------------------------------
# helpers
# ----------------------------------------------------------------------------

def _round_up(x, m):
    return ((x + m - 1) // m) * m


def _pad_dim(a, axis, target):
    if a.shape[axis] == target:
        return a
    pads = [(0, 0)] * a.ndim
    pads[axis] = (0, target - a.shape[axis])
    return jnp.pad(a, pads)


def _pick_tile(dim, maxval, quantum):
    """Largest tile <= maxval (multiple of quantum) that divides dim, else full dim."""
    if dim <= maxval:
        return dim
    t = (maxval // quantum) * quantum
    while t >= quantum:
        if dim % t == 0:
            return t
        t -= quantum
    return dim


def _pad_seq_len(S):
    # Pad once; multiples of 8 (sublane) for short sequences, of the 256
    # attention tile for long ones.
    if S <= 256:
        return _round_up(S, 8)
    return _round_up(S, 256)


def _attn_tiles(Sp):
    if Sp <= 256:
        return Sp, Sp           # single tile
    return 256, 256             # matches 256-deep MXU on v6e/v7x


# ----------------------------------------------------------------------------
# Pallas kernels
# ----------------------------------------------------------------------------

def _mm_kernel(x_ref, w_ref, b_ref, o_ref, acc_ref, *, gelu):
    # Tiled matmul with f32 accumulator.  x:(tm,tk) bf16, w:(tk,tn) bf16,
    # b:(1,tn) f32, o:(tm,tn) bf16, acc:(tm,tn) f32.
    @pl.when(pl.program_id(2) == 0)
    def _init():
        acc_ref[...] = jnp.zeros(acc_ref.shape, acc_ref.dtype)

    acc_ref[...] += jnp.dot(x_ref[...], w_ref[...],
                            preferred_element_type=jnp.float32)

    @pl.when(pl.program_id(2) == pl.num_programs(2) - 1)
    def _fin():
        y = acc_ref[...] + b_ref[...]
        if gelu:
            y = jax.nn.gelu(y, approximate=True)
        o_ref[...] = y.astype(o_ref.dtype)


def _mm_res_kernel(x_ref, w_ref, b_ref, r_ref, o_ref, acc_ref):
    # Same as _mm_kernel but fuses the residual add (r) into the epilogue.
    # (gelu + residual is deliberately unsupported; see pallas_linear assert.)
    @pl.when(pl.program_id(2) == 0)
    def _init():
        acc_ref[...] = jnp.zeros(acc_ref.shape, acc_ref.dtype)

    acc_ref[...] += jnp.dot(x_ref[...], w_ref[...],
                            preferred_element_type=jnp.float32)

    @pl.when(pl.program_id(2) == pl.num_programs(2) - 1)
    def _fin():
        y = acc_ref[...] + b_ref[...] + r_ref[...].astype(jnp.float32)
        o_ref[...] = y.astype(o_ref.dtype)


def _ln_mm_kernel(x_ref, g_ref, beta_ref, w_ref, b_ref, o_ref, xn_ref, *, gelu):
    # Fused LayerNorm (f32) + matmul (bf16 operands, f32 acc) + bias (+GELU).
    # LN is computed ONCE per M-tile (j == 0) into a bf16 VMEM scratch and
    # re-used for every N-tile.
    # x:(tm,K) bf16, g/beta:(1,K) f32, w:(K,tn) bf16, b:(1,tn) f32.
    # TODO(synk): K is untiled (fine for K <= ~2k); add K tiling + accumulator
    #             before scaling dim on v7x's 64 MiB VMEM.
    @pl.when(pl.program_id(1) == 0)
    def _ln():
        x = x_ref[...].astype(jnp.float32)
        mu = jnp.mean(x, axis=-1, keepdims=True)
        var = jnp.mean((x - mu) * (x - mu), axis=-1, keepdims=True)
        xn = (x - mu) * jax.lax.rsqrt(var + 1e-5)
        xn = xn * g_ref[...] + beta_ref[...]
        xn_ref[...] = xn.astype(xn_ref.dtype)

    y = jnp.dot(xn_ref[...], w_ref[...], preferred_element_type=jnp.float32)
    y = y + b_ref[...]
    if gelu:
        y = jax.nn.gelu(y, approximate=True)
    o_ref[...] = y.astype(o_ref.dtype)


def _flash_attn_kernel(q_ref, kv_ref, o_ref, m_sc, l_sc, acc_sc, *,
                       dim, heads, scale, s_len, tkv, needs_mask):
    # Flash-style online softmax reading lane-dense fused QKV blocks.
    #   q_ref : (1, tq, 3*dim) bf16   (only the Q columns are used)
    #   kv_ref: (1, tkv, 3*dim) bf16  (K and V columns are used)
    #   o_ref : (1, tq, dim)   bf16   (heads folded into the lane dim)
    # Heads are processed one at a time with STATIC Dh slices, so the live f32
    # score block is only (tq, tkv) and lane offsets stay static.
    ki = pl.program_id(2)
    Dh = dim // heads

    @pl.when(ki == 0)
    def _init():
        m_sc[...] = jnp.full(m_sc.shape, _NEG_INF, dtype=m_sc.dtype)
        l_sc[...] = jnp.zeros(l_sc.shape, dtype=l_sc.dtype)
        acc_sc[...] = jnp.zeros(acc_sc.shape, dtype=acc_sc.dtype)

    if needs_mask:
        kv_pos = ki * tkv + jax.lax.broadcasted_iota(jnp.int32, (1, tkv), 1)
        kv_valid = kv_pos < s_len                       # (1, tkv)

    for h in range(heads):                              # static unroll
        q = q_ref[0, :, h * Dh:(h + 1) * Dh]                        # (tq, Dh)
        k = kv_ref[0, :, dim + h * Dh:dim + (h + 1) * Dh]           # (tkv, Dh)
        v = kv_ref[0, :, 2 * dim + h * Dh:2 * dim + (h + 1) * Dh]   # (tkv, Dh)

        s = jax.lax.dot_general(q, k, (((1,), (1,)), ((), ())),
                                preferred_element_type=jnp.float32) * scale
        if needs_mask:
            s = jnp.where(kv_valid, s, _NEG_INF)

        m_prev = m_sc[:, h:h + 1]                                   # (tq, 1)
        m_new = jnp.maximum(m_prev, jnp.max(s, axis=-1, keepdims=True))
        alpha = jnp.exp(m_prev - m_new)
        p = jnp.exp(s - m_new)
        l_sc[:, h:h + 1] = alpha * l_sc[:, h:h + 1] + jnp.sum(p, axis=-1,
                                                              keepdims=True)
        acc_sc[:, h * Dh:(h + 1) * Dh] = (
            alpha * acc_sc[:, h * Dh:(h + 1) * Dh]
            + jnp.dot(p.astype(v.dtype), v, preferred_element_type=jnp.float32))
        m_sc[:, h:h + 1] = m_new

    @pl.when(ki == pl.num_programs(2) - 1)
    def _fin():
        for h in range(heads):
            # NOTE: approx reciprocal (~1e-3 rel err) in the softmax denom.
            inv = pl.reciprocal(l_sc[:, h:h + 1], approx=True)
            o_ref[0, :, h * Dh:(h + 1) * Dh] = (
                acc_sc[:, h * Dh:(h + 1) * Dh] * inv).astype(o_ref.dtype)


# ----------------------------------------------------------------------------
# Pallas wrappers (activations are assumed already tile-aligned; no per-call pad)
# ----------------------------------------------------------------------------

def pallas_linear(x, w, b, *, residual=None, gelu=False,
                  tm_max=512, tn_max=512, tk_max=1024):
    """out = [gelu](x @ w + b) [+ residual]; tiled M/N/K, bf16 in / f32 acc."""
    assert not (gelu and residual is not None), \
        "fused gelu + residual ordering is undefined; not supported"
    M, K = x.shape
    _, N = w.shape
    tm = _pick_tile(M, tm_max, 8)
    tn = _pick_tile(N, tn_max, 128)
    tk = _pick_tile(K, tk_max, 128)

    b2 = b.reshape(1, N).astype(jnp.float32)

    in_specs = [
        pl.BlockSpec((tm, tk), lambda i, j, k: (i, k)),
        pl.BlockSpec((tk, tn), lambda i, j, k: (k, j)),
        pl.BlockSpec((1, tn), lambda i, j, k: (0, j)),
    ]
    args = [x, w, b2]
    if residual is not None:
        in_specs.append(pl.BlockSpec((tm, tn), lambda i, j, k: (i, j)))
        args.append(residual)
        kern = _mm_res_kernel
    else:
        kern = functools.partial(_mm_kernel, gelu=gelu)

    return pl.pallas_call(
        kern,
        out_shape=jax.ShapeDtypeStruct((M, N), x.dtype),
        grid=(M // tm, N // tn, K // tk),
        in_specs=in_specs,
        out_specs=pl.BlockSpec((tm, tn), lambda i, j, k: (i, j)),
        scratch_shapes=[pltpu.VMEM((tm, tn), jnp.float32)],
        compiler_params=pltpu.CompilerParams(
            dimension_semantics=("parallel", "parallel", "arbitrary"),
            vmem_limit_bytes=VMEM_LIMIT),
    )(*args)


def pallas_ln_linear(x, g, beta, w, b, *, gelu=False, tm_max=512, tn_max=512):
    """out = [gelu](LayerNorm(x) @ w + b); LN computed once per M-tile."""
    M, K = x.shape
    _, N = w.shape
    tm = _pick_tile(M, tm_max, 8)
    tn = _pick_tile(N, tn_max, 128)

    gp = g.reshape(1, K).astype(jnp.float32)
    betap = beta.reshape(1, K).astype(jnp.float32)
    b2 = b.reshape(1, N).astype(jnp.float32)

    return pl.pallas_call(
        functools.partial(_ln_mm_kernel, gelu=gelu),
        out_shape=jax.ShapeDtypeStruct((M, N), x.dtype),
        grid=(M // tm, N // tn),
        in_specs=[
            pl.BlockSpec((tm, K), lambda i, j: (i, 0)),
            pl.BlockSpec((1, K), lambda i, j: (0, 0)),
            pl.BlockSpec((1, K), lambda i, j: (0, 0)),
            pl.BlockSpec((K, tn), lambda i, j: (0, j)),
            pl.BlockSpec((1, tn), lambda i, j: (0, j)),
        ],
        out_specs=pl.BlockSpec((tm, tn), lambda i, j: (i, j)),
        scratch_shapes=[pltpu.VMEM((tm, K), x.dtype)],   # normalized x, bf16
        compiler_params=pltpu.CompilerParams(
            dimension_semantics=("parallel", "arbitrary"),
            vmem_limit_bytes=VMEM_LIMIT),
    )(x, gp, betap, w, b2)


def pallas_flash_attention(qkv2d, *, B, Sp, dim, heads, s_len):
    """qkv2d: (B*Sp, 3*dim) bf16 fused QKV -> (B*Sp, dim) bf16 attention out."""
    qkv3 = qkv2d.reshape(B, Sp, 3 * dim)          # free view, no transpose
    tq, tkv = _attn_tiles(Sp)
    Dh = dim // heads
    scale = 1.0 / math.sqrt(Dh)
    needs_mask = (Sp != s_len)

    kern = functools.partial(_flash_attn_kernel, dim=dim, heads=heads,
                             scale=scale, s_len=s_len, tkv=tkv,
                             needs_mask=needs_mask)

    out = pl.pallas_call(
        kern,
        out_shape=jax.ShapeDtypeStruct((B, Sp, dim), qkv2d.dtype),
        grid=(B, Sp // tq, Sp // tkv),
        in_specs=[
            pl.BlockSpec((1, tq, 3 * dim), lambda b, qi, ki: (b, qi, 0)),
            pl.BlockSpec((1, tkv, 3 * dim), lambda b, qi, ki: (b, ki, 0)),
        ],
        out_specs=pl.BlockSpec((1, tq, dim), lambda b, qi, ki: (b, qi, 0)),
        scratch_shapes=[
            pltpu.VMEM((tq, heads), jnp.float32),   # running max per head
            pltpu.VMEM((tq, heads), jnp.float32),   # running denom per head
            pltpu.VMEM((tq, dim), jnp.float32),     # lane-dense accumulator
        ],
        compiler_params=pltpu.CompilerParams(
            dimension_semantics=("parallel", "parallel", "arbitrary"),
            vmem_limit_bytes=VMEM_LIMIT),
    )(qkv3, qkv3)
    return out.reshape(B * Sp, dim)


# ----------------------------------------------------------------------------
# Vit3D built from the kernels above
# ----------------------------------------------------------------------------

def extract_patches_3d(x, p):
    # x: [B, C, D, H, W] (NCDHW) -> [B, nPatches, C*p*p*p]
    # TODO(synk): Conv3d patch embed expressed as im2col (XLA reshape/transpose)
    #             feeding the Pallas matmul below.
    B, C, D, H, W = x.shape
    nd, nh, nw = D // p, H // p, W // p
    x = x.reshape(B, C, nd, p, nh, p, nw, p)
    x = x.transpose(0, 2, 4, 6, 1, 3, 5, 7)
    return x.reshape(B, nd * nh * nw, C * p * p * p)


def transformer_block(x2d, prm, B, Sp, dim, heads, s_len):
    # attention branch: fused LN+QKV -> lane-dense flash attention -> proj(+res)
    qkv = pallas_ln_linear(x2d, prm["ln1_g"], prm["ln1_b"],
                           prm["qkv_w"], prm["qkv_b"])            # (B*Sp, 3*dim)
    attn = pallas_flash_attention(qkv, B=B, Sp=Sp, dim=dim, heads=heads,
                                  s_len=s_len)                    # (B*Sp, dim)
    x2d = pallas_linear(attn, prm["proj_w"], prm["proj_b"], residual=x2d)

    # MLP branch: fused LN+FC1+GELU, fused FC2+residual
    h = pallas_ln_linear(x2d, prm["ln2_g"], prm["ln2_b"],
                         prm["fc1_w"], prm["fc1_b"], gelu=True)
    x2d = pallas_linear(h, prm["fc2_w"], prm["fc2_b"], residual=x2d)
    return x2d


def vision_tower_forward(params, images, cfg):
    """VisionTower.forward for config.vision_tower == 'vit3d'."""
    if cfg["vision_tower"] != "vit3d":
        # TODO(synk): 'dcformer' (decomp_small) vision tower variant not implemented.
        raise ValueError(f"Unexpected vision tower: {cfg['vision_tower']}")

    B = images.shape[0]
    dim, heads = cfg["dim"], cfg["heads"]

    # patch embedding (Conv3d, kernel==stride==patch) as patch-extract + matmul
    tok = extract_patches_3d(images, cfg["patch"]).astype(jnp.bfloat16)
    Np, K = tok.shape[1], tok.shape[2]
    x = pallas_linear(tok.reshape(B * Np, K), params["patch_w"], params["patch_b"])
    x = x.reshape(B, Np, dim).astype(jnp.float32)

    # cls token + positional embedding (once per forward; kept as glue)
    cls = jnp.broadcast_to(params["cls"], (B, 1, dim))
    x = (jnp.concatenate([cls, x], axis=1) + params["pos"]).astype(jnp.bfloat16)
    S = Np + 1

    # pad the sequence ONCE; everything below runs on the padded length, padded
    # KV positions are masked inside the attention kernel.
    Sp = _pad_seq_len(S)
    x = _pad_dim(x, 1, Sp)
    x2d = x.reshape(B * Sp, dim)

    collect_hidden = cfg["select_layer"] != 0
    hidden = []
    for lyr in params["layers"]:
        x2d = transformer_block(x2d, lyr, B, Sp, dim, heads, S)
        if collect_hidden:
            hidden.append(x2d)

    # select_layer handling (config.vision_select_layer)
    if cfg["select_layer"] == 0:
        feats2d = x2d
    elif cfg["select_layer"] < 0:
        # TODO(synk): upstream Vit3D returns a single tensor; negative
        # select_layer is interpreted here as "that per-layer hidden state".
        feats2d = hidden[cfg["select_layer"]]
    else:
        raise ValueError("Unexpected select layer")

    image_features = feats2d.reshape(B, Sp, dim)[:, :S]

    # select_feature handling (config.vision_select_feature)
    if cfg["select_feature"] == "patch":
        image_features = image_features[:, 1:]
    elif cfg["select_feature"] == "cls_patch":
        pass
    else:
        raise ValueError("Unexpected select feature")
    return image_features


# ----------------------------------------------------------------------------
# Deterministic parameter init (weights bf16, norms/biases f32)
# ----------------------------------------------------------------------------

def init_params(key, *, in_ch, patch, dim, depth, n_patches, heads):
    K = in_ch * patch * patch * patch
    hid = 4 * dim

    def nrm(k, shape, s=0.02):
        return (s * jax.random.normal(k, shape, dtype=jnp.float32)).astype(jnp.bfloat16)

    keys = jax.random.split(key, 3 + depth)
    params = {
        "patch_w": nrm(keys[0], (K, dim)),
        "patch_b": jnp.zeros((dim,), jnp.float32),
        "cls": (0.02 * jax.random.normal(keys[1], (1, 1, dim))).astype(jnp.float32),
        "pos": (0.02 * jax.random.normal(keys[2], (1, 1 + n_patches, dim))).astype(jnp.float32),
        "layers": [],
    }
    for d in range(depth):
        lk = jax.random.split(keys[3 + d], 4)
        params["layers"].append({
            "ln1_g": jnp.ones((dim,), jnp.float32),
            "ln1_b": jnp.zeros((dim,), jnp.float32),
            "qkv_w": nrm(lk[0], (dim, 3 * dim)),
            "qkv_b": jnp.zeros((3 * dim,), jnp.float32),
            "proj_w": nrm(lk[1], (dim, dim)),
            "proj_b": jnp.zeros((dim,), jnp.float32),
            "ln2_g": jnp.ones((dim,), jnp.float32),
            "ln2_b": jnp.zeros((dim,), jnp.float32),
            "fc1_w": nrm(lk[2], (dim, hid)),
            "fc1_b": jnp.zeros((hid,), jnp.float32),
            "fc2_w": nrm(lk[3], (hid, dim)),
            "fc2_b": jnp.zeros((dim,), jnp.float32),
        })
    return params


# ----------------------------------------------------------------------------
# Pure-JAX reference (bf16-matched, for correctness check only)
# ----------------------------------------------------------------------------

def reference_forward(params, images, cfg):
    bf16 = jnp.bfloat16
    B = images.shape[0]
    dim, heads = cfg["dim"], cfg["heads"]
    Dh = dim // heads

    def mm(a, w):
        return jnp.dot(a.astype(bf16), w.astype(bf16),
                       preferred_element_type=jnp.float32)

    def ln(y, g, b):
        y = y.astype(jnp.float32)
        mu = jnp.mean(y, -1, keepdims=True)
        var = jnp.mean((y - mu) ** 2, -1, keepdims=True)
        return (y - mu) * jax.lax.rsqrt(var + 1e-5) * g + b

    tok = extract_patches_3d(images, cfg["patch"])
    x = mm(tok, params["patch_w"]) + params["patch_b"]
    x = x.astype(bf16).astype(jnp.float32)
    x = jnp.concatenate([jnp.broadcast_to(params["cls"], (B, 1, dim)), x], axis=1)
    x = (x + params["pos"]).astype(bf16)

    for p in params["layers"]:
        S = x.shape[1]
        h = ln(x, p["ln1_g"], p["ln1_b"])
        qkv = (mm(h, p["qkv_w"]) + p["qkv_b"]).astype(bf16)
        qkv = qkv.reshape(B, S, 3, heads, Dh).transpose(2, 0, 3, 1, 4)
        q, k, v = qkv[0], qkv[1], qkv[2]
        s = jnp.einsum("bhqd,bhkd->bhqk", q, k,
                       preferred_element_type=jnp.float32) / math.sqrt(Dh)
        a = jax.nn.softmax(s, axis=-1)
        o = jnp.einsum("bhqk,bhkd->bhqd", a.astype(bf16), v,
                       preferred_element_type=jnp.float32)
        o = o.astype(bf16).transpose(0, 2, 1, 3).reshape(B, S, dim)
        x = (x.astype(jnp.float32) + mm(o, p["proj_w"]) + p["proj_b"]).astype(bf16)
        h = ln(x, p["ln2_g"], p["ln2_b"])
        h = jax.nn.gelu(mm(h, p["fc1_w"]) + p["fc1_b"], approximate=True).astype(bf16)
        x = (x.astype(jnp.float32) + mm(h, p["fc2_w"]) + p["fc2_b"]).astype(bf16)
    return x[:, 1:].astype(jnp.float32)


# ----------------------------------------------------------------------------
if __name__ == "__main__":
    cfg = dict(
        vision_tower="vit3d",
        select_layer=0,          # config.vision_select_layer
        select_feature="patch",  # config.vision_select_feature
        dim=32,                  # config.dim
        depth=2,                 # config.depth
        patch=8,
        heads=4,
        input_size=16,
        in_ch=1,
    )
    n_patches = (cfg["input_size"] // cfg["patch"]) ** 3   # 8

    key = jax.random.PRNGKey(0)
    pkey, xkey = jax.random.split(key)
    params = init_params(pkey, in_ch=cfg["in_ch"], patch=cfg["patch"], dim=cfg["dim"],
                         depth=cfg["depth"], n_patches=n_patches, heads=cfg["heads"])

    # images: NCDHW  [B, C, D, H, W]
    images = jax.random.normal(xkey, (2, cfg["in_ch"], 16, 16, 16), dtype=jnp.float32)

    out = vision_tower_forward(params, images, cfg)
    out = jax.block_until_ready(out)
    assert out.shape == (2, n_patches, cfg["dim"]), out.shape

    ref = jax.block_until_ready(reference_forward(params, images, cfg))
    err = float(jnp.max(jnp.abs(out.astype(jnp.float32) - ref)))
    assert err < 2e-2, err

    print("KERNEL_OK")
</pallas_src>

<mosaic_0001>
module attributes {stable_mosaic.version = 11 : i64} {
  func.func @_mm_kernel(%arg0: i32, %arg1: i32, %arg2: i32, %arg3: memref<16x512xbf16, #tpu.memory_space<vmem>>, %arg4: memref<512x32xbf16, #tpu.memory_space<vmem>>, %arg5: memref<1x32xf32, #tpu.memory_space<vmem>>, %arg6: memref<16x32xbf16, #tpu.memory_space<vmem>>, %arg7: memref<16x32xf32, #tpu.memory_space<vmem>>) attributes {dimension_semantics = [#tpu.dimension_semantics<parallel>, #tpu.dimension_semantics<parallel>, #tpu.dimension_semantics<arbitrary>], iteration_bounds = array<i64: 1, 1, 1>, scalar_prefetch = 0 : i64, scratch_operands = 1 : i64, tpu.core_type = #tpu.core_type<tc>, window_params = [{transform_indices = @transform_0, window_bounds = array<i64: 16, 512>}, {transform_indices = @transform_1, window_bounds = array<i64: 512, 32>}, {transform_indices = @transform_2, window_bounds = array<i64: 1, 32>}, {transform_indices = @transform_3, window_bounds = array<i64: 16, 32>}]} {
    %c0_i32 = arith.constant 0 : i32
    %0 = arith.cmpi eq, %arg2, %c0_i32 : i32
    %1 = arith.extui %0 : i1 to i32
    %c0_i32_0 = arith.constant 0 : i32
    %2 = arith.cmpi ne, %1, %c0_i32_0 : i32
    scf.if %2 {
      %cst_10 = arith.constant 0.000000e+00 : f32
      %12 = vector.broadcast %cst_10 : f32 to vector<16x32xf32>
      %c0_11 = arith.constant 0 : index
      %c0_12 = arith.constant 0 : index
      %13 = vector.load %arg7[%c0_11, %c0_12] : memref<16x32xf32, #tpu.memory_space<vmem>>, vector<16x32xf32>
      tpu.vector_store %arg7[%c0_11, %c0_12], %12 {strides = array<i32>} : memref<16x32xf32, #tpu.memory_space<vmem>>, vector<16x32xf32>,
    } else {
    }
    %c0 = arith.constant 0 : index
    %c0_1 = arith.constant 0 : index
    %3 = vector.load %arg7[%c0, %c0_1] : memref<16x32xf32, #tpu.memory_space<vmem>>, vector<16x32xf32>
    %c0_2 = arith.constant 0 : index
    %c0_3 = arith.constant 0 : index
    %4 = vector.load %arg3[%c0_2, %c0_3] : memref<16x512xbf16, #tpu.memory_space<vmem>>, vector<16x512xbf16>
    %c0_4 = arith.constant 0 : index
    %c0_5 = arith.constant 0 : index
    %5 = vector.load %arg4[%c0_4, %c0_5] : memref<512x32xbf16, #tpu.memory_space<vmem>>, vector<512x32xbf16>
    %cst = arith.constant dense<0.000000e+00> : vector<16x32xf32>
    %6 = tpu.matmul %4, %5, %cst {dimension_numbers = #tpu.dot_dimension_numbers<[1], [0], [0], [1], [0, 0, 1, 1], [], []>} : vector<16x512xbf16>, vector<512x32xbf16>, vector<16x32xf32> -> vector<16x32xf32>
    %7 = arith.addf %3, %6 : vector<16x32xf32>
    %c0_6 = arith.constant 0 : index
    %c0_7 = arith.constant 0 : index
    %8 = vector.load %arg7[%c0_6, %c0_7] : memref<16x32xf32, #tpu.memory_space<vmem>>, vector<16x32xf32>
    tpu.vector_store %arg7[%c0_6, %c0_7], %7 {strides = array<i32>} : memref<16x32xf32, #tpu.memory_space<vmem>>, vector<16x32xf32>,
    %c0_i32_8 = arith.constant 0 : i32
    %9 = arith.cmpi eq, %arg2, %c0_i32_8 : i32
    %10 = arith.extui %9 : i1 to i32
    %c0_i32_9 = arith.constant 0 : i32
    %11 = arith.cmpi ne, %10, %c0_i32_9 : i32
    scf.if %11 {
      %c0_10 = arith.constant 0 : index
      %c0_11 = arith.constant 0 : index
      %12 = vector.load %arg7[%c0_10, %c0_11] : memref<16x32xf32, #tpu.memory_space<vmem>>, vector<16x32xf32>
      %c0_12 = arith.constant 0 : index
      %c0_13 = arith.constant 0 : index
      %13 = vector.load %arg5[%c0_12, %c0_13] : memref<1x32xf32, #tpu.memory_space<vmem>>, vector<1x32xf32>
      %14 = vector.broadcast %13 : vector<1x32xf32> to vector<16x32xf32>
      %15 = arith.addf %12, %14 : vector<16x32xf32>
      %16 = arith.truncf %15 : vector<16x32xf32> to vector<16x32xbf16>
      %c0_14 = arith.constant 0 : index
      %c0_15 = arith.constant 0 : index
      %17 = vector.load %arg6[%c0_14, %c0_15] : memref<16x32xbf16, #tpu.memory_space<vmem>>, vector<16x32xbf16>
      tpu.vector_store %arg6[%c0_14, %c0_15], %16 {strides = array<i32>} : memref<16x32xbf16, #tpu.memory_space<vmem>>, vector<16x32xbf16>,
    } else {
    }
    return
  }
  func.func @transform_0(%arg0: i32, %arg1: i32, %arg2: i32) -> (i32, i32) {
    %c0_i32 = arith.constant 0 : i32
    return %arg0, %arg2 : i32, i32
  }
  func.func @transform_1(%arg0: i32, %arg1: i32, %arg2: i32) -> (i32, i32) {
    %c0_i32 = arith.constant 0 : i32
    return %arg2, %arg1 : i32, i32
  }
  func.func @transform_2(%arg0: i32, %arg1: i32, %arg2: i32) -> (i32, i32) {
    %c0_i32 = arith.constant 0 : i32
    %c0_i32_0 = arith.constant 0 : i32
    return %c0_i32, %arg1 : i32, i32
  }
  func.func @transform_3(%arg0: i32, %arg1: i32, %arg2: i32) -> (i32, i32) {
    %c0_i32 = arith.constant 0 : i32
    return %arg0, %arg1 : i32, i32
  }
}

</mosaic_0001>

<bundles_post_ra>
// kernel: tpu_custom_call.1
= control target key start
LH: loop header
LB: loop body
LE: loop exit
PB: predicated region body
PF: predicated region fallthrough
CT: control target
= control target key end

     0   :  { %s724_s0 = inlined_call_operand.vmem [shape: bf16[16,512], index: 0, kind: input, shape index: {}]   ;;  %s725_s1 = inlined_call_operand.vmem [shape: bf16[512,32], index: 1, kind: input, shape index: {}]   ;;  %s726_s2 = inlined_call_operand.vmem [shape: f32[1,32], index: 2, kind: input, shape index: {}]   ;;  %s727_s3 = inlined_call_operand.hbm [shape: bf16[16,32], index: 3, kind: output, shape index: {}]  }
   0x1   :  { %v522_v0 = vld [vmem:[%s725_s1 + $0x78] sm:$0xff]   ;;  %v526_v4 = vld [vmem:[%s725_s1 + $0x70] sm:$0xff]   ;;  %v530_v8 = vld [vmem:[%s725_s1 + $0x68] sm:$0xff]  }
   0x2   :  { %v523_v1 = vld [vmem:[%s725_s1 + $0xf8] sm:$0xff]   ;;  %474 = vmatprep.subr.bf16.mxu0 %v522_v0  ;;  %v527_v5 = vld [vmem:[%s725_s1 + $0xf0] sm:$0xff]   ;;  %v531_v9 = vld [vmem:[%s725_s1 + $0xe8] sm:$0xff]  }
   0x3   :  { %v524_v2 = vld [vmem:[%s725_s1 + $0x38] sm:$0xff]   ;;  %496 = vmatprep.subr.bf16.mxu1 %v523_v1  ;;  %v528_v6 = vld [vmem:[%s725_s1 + $0x30] sm:$0xff]   ;;  %v532_v10 = vld [vmem:[%s725_s1 + $0x28] sm:$0xff]  }
   0x4   :  { %v525_v3 = vld [vmem:[%s725_s1 + $0xb8] sm:$0xff]   ;;  %475 = vmatpush3.bf16.msra.mxu0 %v524_v2  ;;  %v529_v7 = vld [vmem:[%s725_s1 + $0xb0] sm:$0xff]   ;;  %v533_v11 = vld [vmem:[%s725_s1 + $0xa8] sm:$0xff]  }
   0x5   :  { %497 = vmatpush3.bf16.msra.mxu1 %v525_v3  ;;  %476 = vmatprep.subr.bf16.mxu0 %v526_v4  ;;  %v534_v12 = vld [vmem:[%s725_s1 + $0x60] sm:$0xff]   ;;  %v538_v16 = vld [vmem:[%s725_s1 + $0x58] sm:$0xff]   ;;  %v542_v20 = vld [vmem:[%s725_s1 + $0x50] sm:$0xff]  }
   0x6   :  { %498 = vmatprep.subr.bf16.mxu1 %v527_v5  ;;  %v535_v13 = vld [vmem:[%s725_s1 + $0xe0] sm:$0xff]   ;;  %v539_v17 = vld [vmem:[%s725_s1 + $0xd8] sm:$0xff]   ;;  %v543_v21 = vld [vmem:[%s725_s1 + $0xd0] sm:$0xff]  }
   0x7   :  { %v536_v14 = vld [vmem:[%s725_s1 + $0x20] sm:$0xff]   ;;  %v540_v18 = vld [vmem:[%s725_s1 + $0x18] sm:$0xff]   ;;  %v544_v22 = vld [vmem:[%s725_s1 + $0x10] sm:$0xff]  }
   0x8   :  { %477 = vmatpush3.bf16.msra.mxu0 %v528_v6  ;;  %v537_v15 = vld [vmem:[%s725_s1 + $0xa0] sm:$0xff]   ;;  %v541_v19 = vld [vmem:[%s725_s1 + $0x98] sm:$0xff]   ;;  %v545_v23 = vld [vmem:[%s725_s1 + $0x90] sm:$0xff]  }
   0x9   :  { %499 = vmatpush3.bf16.msra.mxu1 %v529_v7  ;;  %478 = vmatprep.subr.bf16.mxu0 %v530_v8  ;;  %v546_v24 = vld [vmem:[%s725_s1 + $0x48] sm:$0xff]   ;;  %v550_v28 = vld [vmem:[%s725_s1 + $0x40] sm:$0xff]  }
   0xa   :  { %500 = vmatprep.subr.bf16.mxu1 %v531_v9  ;;  %v547_v25 = vld [vmem:[%s725_s1 + $0xc8] sm:$0xff]   ;;  %v551_v29 = vld [vmem:[%s725_s1 + $0xc0] sm:$0xff]  }
   0xb   :  { %v548_v26 = vld [vmem:[%s725_s1 + $0x8] sm:$0xff]   ;;  %v552_v30 = vld [vmem:[%s725_s1] sm:$0xff]  }
   0xc   :  { %479 = vmatpush3.bf16.msra.mxu0 %v532_v10  ;;  %v549_v27 = vld [vmem:[%s725_s1 + $0x88] sm:$0xff]   ;;  %v553_v31 = vld [vmem:[%s725_s1 + $0x80] sm:$0xff]  }
   0xd   :  { %501 = vmatpush3.bf16.msra.mxu1 %v533_v11  ;;  %480 = vmatprep.subr.bf16.mxu0 %v534_v12  ;;  %v554_v32 = vld [vmem:[%s724_s0] ss:$16 sps:$4 sm:$0xff]   ;;  %v556_v33 = vld [vmem:[%s724_s0 + $0x4] ss:$16 sps:$4 sm:$0xff]   ;;  %v557_v34 = vld [vmem:[%s724_s0 + $0x8] ss:$16 sps:$4 sm:$0xff]  }
   0xe   :  { %502 = vmatprep.subr.bf16.mxu1 %v535_v13  ;;  %v559_v35 = vld [vmem:[%s724_s0 + $0xc] ss:$16 sps:$4 sm:$0xff]  }
  0x10   :  { %481 = vmatpush3.bf16.msra.mxu0 %v536_v14 }
  0x11   :  { %503 = vmatpush3.bf16.msra.mxu1 %v537_v15  ;;  %482 = vmatprep.subr.bf16.mxu0 %v538_v16 }
  0x12   :  { %504 = vmatprep.subr.bf16.mxu1 %v539_v17 }
  0x14   :  { %483 = vmatpush3.bf16.msra.mxu0 %v540_v18 }
  0x15   :  { %505 = vmatpush3.bf16.msra.mxu1 %v541_v19  ;;  %484 = vmatprep.subr.bf16.mxu0 %v542_v20 }
  0x16   :  { %506 = vmatprep.subr.bf16.mxu1 %v543_v21 }
  0x18   :  { %485 = vmatpush3.bf16.msra.mxu0 %v544_v22 }
  0x19   :  { %507 = vmatpush3.bf16.msra.mxu1 %v545_v23  ;;  %486 = vmatprep.subr.bf16.mxu0 %v546_v24 }
  0x1a   :  { %508 = vmatprep.subr.bf16.mxu1 %v547_v25 }
  0x1c   :  { %487 = vmatpush3.bf16.msra.mxu0 %v548_v26 }
  0x1d   :  { %509 = vmatpush3.bf16.msra.mxu1 %v549_v27  ;;  %488 = vmatprep.subr.bf16.mxu0 %v550_v28 }
  0x1e   :  { %510 = vmatprep.subr.bf16.mxu1 %v551_v29 }
  0x20   :  { %489 = vmatpush3.bf16.msra.mxu0 %v552_v30 }
  0x21   :  { %511 = vmatpush3.bf16.msra.mxu1 %v553_v31 }
  0x22   :  { %8 = vsyncpa [#allocation4], 0  ;;  %337 = vmatprep.mubr.bf16.mxu0 %v556_v33  ;;  %378 = vmatprep.mubr.bf16.mxu1 %v559_v35  ;;  %vm20_vm0 = vcmask 261120   ;;  %v582_v36 = vmov 0.0   ;;  %v469_v55 = vld [vmem:[%s726_s2] ss:$0 sm:$0xff] }
  0x23   :  { %338 = vmatmul.mubr.bf16.vlgmr.msra.gmra.mxu0 %v554_v32  ;;  %21 = vst.msk [vmem:[#allocation2] sm:$0xff] %vm20_vm0, %v582_v36  ;;  %22 = vst.msk [vmem:[#allocation2 + $0x8] sm:$0xff] %vm20_vm0, %v582_v36  ;;  %vm414_vm1 = vcmask 257024   ;;  %s583_s30 = smov [#allocation3]  }
  0x24   :  { %379 = vmatmul.mubr.bf16.vlgmr.msra.gmra.mxu1 %v557_v34  ;;  %s422_s4 = sshll.u32 %s583_s30, 4  ;;  %s423_s4 = int_to_ptr.vmem [resolvable:$true] %s422_s4 }
  0x25   :  { %s560_s5 = scalar_lea.vmem %s423_s4, 128  ;;  %p565_p1 = scmp.lt.s32.totalorder %s423_s4, %s423_s4 }
  0x26   :  { %p561_p0 = scmp.ne.s32.totalorder %s423_s4, %s560_s5  ;;  %p566_p2 = scmp.lt.s32.totalorder %s560_s5, %s560_s5 }
  0x28   :  { %p567_p3 = por %p566_p2, %p565_p1 }
  0x2a   :  { %v23_v44 = vld [vmem:[#allocation2] sm:$0xff]  ;;  %v24_v52 = vld [vmem:[#allocation2 + $0x8] sm:$0xff]  ;;  %p568_p4 = pnand %p567_p3, %p561_p0 }
  0xe3   :  { %v490_v37 = vpop.f32.mrf.mxu0 }
  0xe4   :  { %v512_v38 = vpop.f32.mrf.mxu1 }
  0xe5   :  { %v491_v39 = vpop.f32.mrf.mxu0 }
  0xe6   :  { %v492_v40 = vadd.f32 %v491_v39, %v490_v37  ;;  %v513_v41 = vpop.f32.mrf.mxu1 }
  0xe7   :  { %v514_v42 = vadd.f32 %v513_v41, %v512_v38  ;;  %v493_v43 = vpop.f32.mrf.mxu0 }
  0xe8   :  { %v515_v45 = vpop.f32.mrf.mxu1 }
  0xe9   :  { %v381_v46 = vadd.f32 %v514_v42, %v492_v40  ;;  %v494_v47 = vpop.f32.mrf.mxu0 }
  0xea   :  { %v495_v48 = vadd.f32 %v494_v47, %v493_v43  ;;  %v516_v49 = vpop.f32.mrf.mxu1 }
  0xeb   :  { %v387_v50 = vadd.f32 %v381_v46, %v23_v44  ;;  %v517_v51 = vadd.f32 %v516_v49, %v515_v45 }
  0xed   :  { %390 = vst.msk [vmem:[#allocation2] sm:$0xff] %vm20_vm0, %v387_v50  ;;  %v384_v53 = vadd.f32 %v517_v51, %v495_v48 }
  0xef   :  { %v388_v54 = vadd.f32 %v384_v53, %v24_v52 }
  0xf1   :  { %391 = vst.msk [vmem:[#allocation2 + $0x8] sm:$0xff] %vm20_vm0, %v388_v54 }
  0xf4   :  { %v395_v56 = vld [vmem:[#allocation2] sm:$0xff] }
  0xf5   :  { %v404_v57 = vadd.f32 %v469_v55, %v395_v56 }
  0xf7   :  { %v472_v58 = vpack.c.bf16 %v404_v57, %v404_v57 }
  0xf8   :  { %v396_v59 = vld [vmem:[#allocation2 + $0x8] sm:$0xff] }
  0xf9   :  { %v405_v60 = vadd.f32 %v469_v55, %v396_v59  ;;  %415 = vst.msk [vmem:[#allocation3] sm:$0xf] %vm414_vm1, %v472_v58 }
  0xfb   :  { %v473_v61 = vpack.c.bf16 %v405_v60, %v405_v60 }
  0xfd   :  { %416 = vst.msk [vmem:[#allocation3 + $0x4] sm:$0xf] %vm414_vm1, %v473_v61 }
  0xfe   :  { %571 = shalt.err (!%p568_p4)
}
  0xff   :  { %s584_s2 = smov 64   ;;  %s585_s6 = smov 4  }
 0x100   :  { %428 = dma.vmem_to_hbm [thread:$0]  %s423_s4, 128, %s727_s3, [#allocation4], %s584_s2, %s584_s2, %s585_s6  }
 0x101   :  { %580 = dma.done.wait [#allocation4], 128  }
 0x102   :  { %581 = vsyncadd [#allocation4], 4294967168 }
 0x103   :  { %432 = vsyncpa [#allocation4], 1 }

</bundles_post_ra>
